<compile_context>
chip_gen: v7x
topology: tpu7x:2x2x1
jax: 0.10.0
libtpu: 0.0.40
codegen_flags: <defaults>
</compile_context>

<pallas_src>
import jax
import jax.numpy as jnp
from jax.experimental import pallas as pl
from jax.experimental.pallas import tpu as pltpu

# -----------------------------------------------------------------------------
# Model configuration (consistent with the module's constructor).
# -----------------------------------------------------------------------------
BATCH = 8
INPUT_SIZE = 64
HIDDEN_SIZES = [512, 256, 128]
NUM_TAGS = 16
OUT_PAD = 128          # lane-dense padded output width (sliced back to NUM_TAGS)
BN_EPS = 1e-5


def _round_up(n, m):
    return ((n + m - 1) // m) * m


# -----------------------------------------------------------------------------
# Fused MLP kernel: 3 x (Linear[BN-folded, int8 weights] + ReLU) + Linear
# + sigmoid.  One grid step processes a (TM, *) batch tile; weights stay
# resident in VMEM across steps.
# -----------------------------------------------------------------------------
def mouthfeel_kernel(
    x_ref,
    w1_ref, s1_ref, b1_ref,
    w2_ref, s2_ref, b2_ref,
    w3_ref, s3_ref, b3_ref,
    w4_ref, s4_ref, b4_ref,
    out_ref,
):
    def hidden_layer(h, w_ref, s_ref, b_ref):
        # int8 weights dequantized to bf16 on the fly (VPU cast hides under the
        # MXU/DMA slack); bf16 x bf16 operands, f32 accumulate on the MXU.
        z = jnp.dot(h, w_ref[...].astype(jnp.bfloat16),
                    preferred_element_type=jnp.float32)
        # Per-output-channel dequant scale folded into the bias-add epilogue.
        z = z * s_ref[...] + b_ref[...]
        # ReLU (Dropout is identity at inference).  Cast to bf16 once here so
        # the next matmul's LHS needs no extra per-layer astype.
        return jnp.maximum(z, 0.0).astype(jnp.bfloat16)

    h = hidden_layer(x_ref[...], w1_ref, s1_ref, b1_ref)
    h = hidden_layer(h, w2_ref, s2_ref, b2_ref)
    h = hidden_layer(h, w3_ref, s3_ref, b3_ref)

    # Output Linear (padded to 128 lanes) + exact sigmoid via one EUP tanh:
    # sigmoid(x) = 0.5*tanh(0.5*x) + 0.5, computed in f32 (v5e-safe).
    z = jnp.dot(h, w4_ref[...].astype(jnp.bfloat16),
                preferred_element_type=jnp.float32)
    logits = z * s4_ref[...] + b4_ref[...]
    out_ref[...] = 0.5 * jnp.tanh(0.5 * logits) + 0.5


def mouthfeel_forward(x, kernel_params, *, block_m=256):
    """x: (B, INPUT_SIZE) f32.  kernel_params: flat list in kernel arg order.

    block_m: batch tile.  256 is a good default on v6e/v7x; use 128 on v5e.
    Must stay a multiple of 16 (bf16 LHS sublane packing).
    """
    B = x.shape[0]
    tm = min(block_m, max(16, _round_up(B, 16)))
    Bp = _round_up(B, tm)

    xb = x.astype(jnp.bfloat16)
    if Bp != B:
        xb = jnp.zeros((Bp, INPUT_SIZE), jnp.bfloat16).at[:B].set(xb)

    grid = (pl.cdiv(Bp, tm),)

    # x / out move with the grid step; every weight/scale/bias uses a constant
    # block index, so Pallas DMAs it once and keeps it VMEM-resident.
    x_spec = pl.BlockSpec((tm, INPUT_SIZE), lambda i: (i, 0))
    param_specs = [pl.BlockSpec(p.shape, lambda i: (0, 0)) for p in kernel_params]
    out_spec = pl.BlockSpec((tm, OUT_PAD), lambda i: (i, 0))

    # Advisory cost model for XLA's scheduler (latency-bound small call).
    dims = [INPUT_SIZE] + HIDDEN_SIZES + [OUT_PAD]
    flops = 2 * Bp * sum(dims[k] * dims[k + 1] for k in range(len(dims) - 1))
    weight_bytes = sum(int(p.size) * p.dtype.itemsize for p in kernel_params)
    bytes_accessed = weight_bytes + int(xb.size) * 2 + Bp * OUT_PAD * 4
    cost = pl.CostEstimate(flops=flops,
                           transcendentals=Bp * OUT_PAD,
                           bytes_accessed=bytes_accessed)

    out_padded = pl.pallas_call(
        mouthfeel_kernel,
        out_shape=jax.ShapeDtypeStruct((Bp, OUT_PAD), jnp.float32),
        grid=grid,
        in_specs=[x_spec] + param_specs,
        out_specs=out_spec,
        compiler_params=pltpu.CompilerParams(
            dimension_semantics=("parallel",)),   # engages both TCs on v7x
        cost_estimate=cost,
    )(xb, *kernel_params)

    # Padded rows / padded lanes carry garbage by construction; slice them off.
    return out_padded[:B, :NUM_TAGS]


# -----------------------------------------------------------------------------
# Deterministic parameter construction (synthetic init, no checkpoint load).
# Returns (kernel_params, ref_exact, ref_quant):
#   kernel_params: BN folded, per-channel int8 weights + f32 scale + f32 bias,
#                  last layer padded to 128 output lanes.
#   ref_exact:     f32 folded (w, b) pairs == exact PyTorch eval-mode math.
#   ref_quant:     dequantized f32 (w, b) pairs == the kernel's exact math
#                  (isolates kernel bugs from intentional quantization error).
# -----------------------------------------------------------------------------
def make_params(key):
    dims = [INPUT_SIZE] + HIDDEN_SIZES + [NUM_TAGS]
    kernel_params, ref_exact, ref_quant = [], [], []
    for li in range(len(dims) - 1):
        d_in, d_out = dims[li], dims[li + 1]
        key, kw, kb, kg, kbt, km, kv = jax.random.split(key, 7)
        # Linear weight in PyTorch layout (out, in), transposed for `h @ W`.
        w = jax.random.normal(kw, (d_out, d_in), jnp.float32) / jnp.sqrt(d_in)
        b = jax.random.normal(kb, (d_out,), jnp.float32) * 0.01
        w_t = w.T                                            # (d_in, d_out)

        if li < len(HIDDEN_SIZES):
            # BatchNorm1d eval-mode parameters, folded into the Linear.
            gamma = 1.0 + 0.1 * jax.random.normal(kg, (d_out,), jnp.float32)
            beta = 0.1 * jax.random.normal(kbt, (d_out,), jnp.float32)
            mu = 0.1 * jax.random.normal(km, (d_out,), jnp.float32)
            var = 1.0 + 0.1 * jax.random.uniform(kv, (d_out,), jnp.float32)
            bn_scale = gamma / jnp.sqrt(var + BN_EPS)
            w_f = w_t * bn_scale[None, :]
            b_f = b * bn_scale + (beta - mu * bn_scale)
            d_pad = d_out
        else:
            w_f, b_f = w_t, b
            d_pad = OUT_PAD                                   # lane-dense pad
        ref_exact.append((w_f, b_f))

        # Pad output channels (only the last layer actually grows: 16 -> 128).
        w_p = jnp.zeros((d_in, d_pad), jnp.float32).at[:, :d_out].set(w_f)
        b_p = jnp.zeros((d_pad,), jnp.float32).at[:d_out].set(b_f)

        # Symmetric per-output-channel int8 quantization of the weights.
        q_scale = jnp.maximum(jnp.max(jnp.abs(w_p), axis=0) / 127.0, 1e-8)
        w_q = jnp.clip(jnp.round(w_p / q_scale[None, :]), -127.0, 127.0)
        w_q = w_q.astype(jnp.int8)
        w_dq = w_q.astype(jnp.float32) * q_scale[None, :]
        ref_quant.append((w_dq[:, :d_out], b_f))

        kernel_params += [w_q,
                          q_scale.reshape(1, d_pad).astype(jnp.float32),
                          b_p.reshape(1, d_pad)]
    return kernel_params, ref_exact, ref_quant


# Pure-JAX f32 reference (eval-mode semantics of the PyTorch module).
def reference_forward(x, params):
    h = x
    for w, b in params[:-1]:
        h = jnp.maximum(h @ w + b, 0.0)
    w, b = params[-1]
    return jax.nn.sigmoid(h @ w + b)


if __name__ == "__main__":
    key = jax.random.PRNGKey(0)
    key, kx = jax.random.split(key)
    x = jax.random.normal(kx, (BATCH, INPUT_SIZE), jnp.float32)

    kernel_params, ref_exact, ref_quant = make_params(key)

    out = jax.block_until_ready(mouthfeel_forward(x, kernel_params))
    assert out.shape == (BATCH, NUM_TAGS)

    # 1) Tight check vs a pure-JAX reference using the SAME quantized weights:
    #    isolates kernel bugs from the intentional int8/bf16 quantization.
    ref_q = reference_forward(x, ref_quant)
    assert jnp.allclose(out, ref_q, atol=1e-2), "kernel math mismatch"

    # 2) Looser check vs exact f32 PyTorch eval-mode semantics (BN folded):
    #    bounds the int8-weight + bf16-activation quantization error.
    ref_f = reference_forward(x, ref_exact)
    assert jnp.allclose(out, ref_f, atol=5e-2), "quantization error too large"

    print("KERNEL_OK")
</pallas_src>

<mosaic_0001>
module attributes {stable_mosaic.version = 11 : i64} {
  func.func @mouthfeel_kernel(%arg0: i32, %arg1: memref<16x64xbf16, #tpu.memory_space<vmem>>, %arg2: memref<64x512xi8, #tpu.memory_space<vmem>>, %arg3: memref<1x512xf32, #tpu.memory_space<vmem>>, %arg4: memref<1x512xf32, #tpu.memory_space<vmem>>, %arg5: memref<512x256xi8, #tpu.memory_space<vmem>>, %arg6: memref<1x256xf32, #tpu.memory_space<vmem>>, %arg7: memref<1x256xf32, #tpu.memory_space<vmem>>, %arg8: memref<256x128xi8, #tpu.memory_space<vmem>>, %arg9: memref<1x128xf32, #tpu.memory_space<vmem>>, %arg10: memref<1x128xf32, #tpu.memory_space<vmem>>, %arg11: memref<128x128xi8, #tpu.memory_space<vmem>>, %arg12: memref<1x128xf32, #tpu.memory_space<vmem>>, %arg13: memref<1x128xf32, #tpu.memory_space<vmem>>, %arg14: memref<16x128xf32, #tpu.memory_space<vmem>>) attributes {dimension_semantics = [#tpu.dimension_semantics<parallel>], iteration_bounds = array<i64: 1>, scalar_prefetch = 0 : i64, scratch_operands = 0 : i64, tpu.core_type = #tpu.core_type<tc>, window_params = [{transform_indices = @transform_0, window_bounds = array<i64: 16, 64>}, {pipeline_mode = #tpu.pipeline_mode<synchronous>, transform_indices = @transform_1, window_bounds = array<i64: 64, 512>}, {pipeline_mode = #tpu.pipeline_mode<synchronous>, transform_indices = @transform_2, window_bounds = array<i64: 1, 512>}, {pipeline_mode = #tpu.pipeline_mode<synchronous>, transform_indices = @transform_3, window_bounds = array<i64: 1, 512>}, {pipeline_mode = #tpu.pipeline_mode<synchronous>, transform_indices = @transform_4, window_bounds = array<i64: 512, 256>}, {pipeline_mode = #tpu.pipeline_mode<synchronous>, transform_indices = @transform_5, window_bounds = array<i64: 1, 256>}, {pipeline_mode = #tpu.pipeline_mode<synchronous>, transform_indices = @transform_6, window_bounds = array<i64: 1, 256>}, {pipeline_mode = #tpu.pipeline_mode<synchronous>, transform_indices = @transform_7, window_bounds = array<i64: 256, 128>}, {pipeline_mode = #tpu.pipeline_mode<synchronous>, transform_indices = @transform_8, window_bounds = array<i64: 1, 128>}, {pipeline_mode = #tpu.pipeline_mode<synchronous>, transform_indices = @transform_9, window_bounds = array<i64: 1, 128>}, {pipeline_mode = #tpu.pipeline_mode<synchronous>, transform_indices = @transform_10, window_bounds = array<i64: 128, 128>}, {pipeline_mode = #tpu.pipeline_mode<synchronous>, transform_indices = @transform_11, window_bounds = array<i64: 1, 128>}, {pipeline_mode = #tpu.pipeline_mode<synchronous>, transform_indices = @transform_12, window_bounds = array<i64: 1, 128>}, {transform_indices = @transform_13, window_bounds = array<i64: 16, 128>}]} {
    %c0 = arith.constant 0 : index
    %c0_0 = arith.constant 0 : index
    %0 = vector.load %arg1[%c0, %c0_0] : memref<16x64xbf16, #tpu.memory_space<vmem>>, vector<16x64xbf16>
    %c0_1 = arith.constant 0 : index
    %c0_2 = arith.constant 0 : index
    %1 = vector.load %arg2[%c0_1, %c0_2] : memref<64x512xi8, #tpu.memory_space<vmem>>, vector<64x512xi8>
    %2 = arith.sitofp %1 : vector<64x512xi8> to vector<64x512xbf16>
    %cst = arith.constant dense<0.000000e+00> : vector<16x512xf32>
    %3 = tpu.matmul %0, %2, %cst {dimension_numbers = #tpu.dot_dimension_numbers<[1], [0], [0], [1], [0, 0, 1, 1], [], []>} : vector<16x64xbf16>, vector<64x512xbf16>, vector<16x512xf32> -> vector<16x512xf32>
    %c0_3 = arith.constant 0 : index
    %c0_4 = arith.constant 0 : index
    %4 = vector.load %arg3[%c0_3, %c0_4] : memref<1x512xf32, #tpu.memory_space<vmem>>, vector<1x512xf32>
    %5 = vector.broadcast %4 : vector<1x512xf32> to vector<16x512xf32>
    %6 = arith.mulf %3, %5 : vector<16x512xf32>
    %c0_5 = arith.constant 0 : index
    %c0_6 = arith.constant 0 : index
    %7 = vector.load %arg4[%c0_5, %c0_6] : memref<1x512xf32, #tpu.memory_space<vmem>>, vector<1x512xf32>
    %8 = vector.broadcast %7 : vector<1x512xf32> to vector<16x512xf32>
    %9 = arith.addf %6, %8 : vector<16x512xf32>
    %cst_7 = arith.constant 0.000000e+00 : f32
    %10 = vector.broadcast %cst_7 : f32 to vector<16x512xf32>
    %11 = arith.maximumf %9, %10 : vector<16x512xf32>
    %12 = arith.truncf %11 : vector<16x512xf32> to vector<16x512xbf16>
    %c0_8 = arith.constant 0 : index
    %c0_9 = arith.constant 0 : index
    %13 = vector.load %arg5[%c0_8, %c0_9] : memref<512x256xi8, #tpu.memory_space<vmem>>, vector<512x256xi8>
    %14 = arith.sitofp %13 : vector<512x256xi8> to vector<512x256xbf16>
    %cst_10 = arith.constant dense<0.000000e+00> : vector<16x256xf32>
    %15 = tpu.matmul %12, %14, %cst_10 {dimension_numbers = #tpu.dot_dimension_numbers<[1], [0], [0], [1], [0, 0, 1, 1], [], []>} : vector<16x512xbf16>, vector<512x256xbf16>, vector<16x256xf32> -> vector<16x256xf32>
    %c0_11 = arith.constant 0 : index
    %c0_12 = arith.constant 0 : index
    %16 = vector.load %arg6[%c0_11, %c0_12] : memref<1x256xf32, #tpu.memory_space<vmem>>, vector<1x256xf32>
    %17 = vector.broadcast %16 : vector<1x256xf32> to vector<16x256xf32>
    %18 = arith.mulf %15, %17 : vector<16x256xf32>
    %c0_13 = arith.constant 0 : index
    %c0_14 = arith.constant 0 : index
    %19 = vector.load %arg7[%c0_13, %c0_14] : memref<1x256xf32, #tpu.memory_space<vmem>>, vector<1x256xf32>
    %20 = vector.broadcast %19 : vector<1x256xf32> to vector<16x256xf32>
    %21 = arith.addf %18, %20 : vector<16x256xf32>
    %cst_15 = arith.constant 0.000000e+00 : f32
    %22 = vector.broadcast %cst_15 : f32 to vector<16x256xf32>
    %23 = arith.maximumf %21, %22 : vector<16x256xf32>
    %24 = arith.truncf %23 : vector<16x256xf32> to vector<16x256xbf16>
    %c0_16 = arith.constant 0 : index
    %c0_17 = arith.constant 0 : index
    %25 = vector.load %arg8[%c0_16, %c0_17] : memref<256x128xi8, #tpu.memory_space<vmem>>, vector<256x128xi8>
    %26 = arith.sitofp %25 : vector<256x128xi8> to vector<256x128xbf16>
    %cst_18 = arith.constant dense<0.000000e+00> : vector<16x128xf32>
    %27 = tpu.matmul %24, %26, %cst_18 {dimension_numbers = #tpu.dot_dimension_numbers<[1], [0], [0], [1], [0, 0, 1, 1], [], []>} : vector<16x256xbf16>, vector<256x128xbf16>, vector<16x128xf32> -> vector<16x128xf32>
    %c0_19 = arith.constant 0 : index
    %c0_20 = arith.constant 0 : index
    %28 = vector.load %arg9[%c0_19, %c0_20] : memref<1x128xf32, #tpu.memory_space<vmem>>, vector<1x128xf32>
    %29 = vector.broadcast %28 : vector<1x128xf32> to vector<16x128xf32>
    %30 = arith.mulf %27, %29 : vector<16x128xf32>
    %c0_21 = arith.constant 0 : index
    %c0_22 = arith.constant 0 : index
    %31 = vector.load %arg10[%c0_21, %c0_22] : memref<1x128xf32, #tpu.memory_space<vmem>>, vector<1x128xf32>
    %32 = vector.broadcast %31 : vector<1x128xf32> to vector<16x128xf32>
    %33 = arith.addf %30, %32 : vector<16x128xf32>
    %cst_23 = arith.constant 0.000000e+00 : f32
    %34 = vector.broadcast %cst_23 : f32 to vector<16x128xf32>
    %35 = arith.maximumf %33, %34 : vector<16x128xf32>
    %36 = arith.truncf %35 : vector<16x128xf32> to vector<16x128xbf16>
    %c0_24 = arith.constant 0 : index
    %c0_25 = arith.constant 0 : index
    %37 = vector.load %arg11[%c0_24, %c0_25] : memref<128x128xi8, #tpu.memory_space<vmem>>, vector<128x128xi8>
    %38 = arith.sitofp %37 : vector<128x128xi8> to vector<128x128xbf16>
    %cst_26 = arith.constant dense<0.000000e+00> : vector<16x128xf32>
    %39 = tpu.matmul %36, %38, %cst_26 {dimension_numbers = #tpu.dot_dimension_numbers<[1], [0], [0], [1], [0, 0, 1, 1], [], []>} : vector<16x128xbf16>, vector<128x128xbf16>, vector<16x128xf32> -> vector<16x128xf32>
    %c0_27 = arith.constant 0 : index
    %c0_28 = arith.constant 0 : index
    %40 = vector.load %arg12[%c0_27, %c0_28] : memref<1x128xf32, #tpu.memory_space<vmem>>, vector<1x128xf32>
    %41 = vector.broadcast %40 : vector<1x128xf32> to vector<16x128xf32>
    %42 = arith.mulf %39, %41 : vector<16x128xf32>
    %c0_29 = arith.constant 0 : index
    %c0_30 = arith.constant 0 : index
    %43 = vector.load %arg13[%c0_29, %c0_30] : memref<1x128xf32, #tpu.memory_space<vmem>>, vector<1x128xf32>
    %44 = vector.broadcast %43 : vector<1x128xf32> to vector<16x128xf32>
    %45 = arith.addf %42, %44 : vector<16x128xf32>
    %cst_31 = arith.constant 5.000000e-01 : f32
    %46 = vector.broadcast %cst_31 : f32 to vector<16x128xf32>
    %47 = arith.mulf %46, %45 : vector<16x128xf32>
    %48 = math.tanh %47 : vector<16x128xf32>
    %cst_32 = arith.constant 5.000000e-01 : f32
    %49 = vector.broadcast %cst_32 : f32 to vector<16x128xf32>
    %50 = arith.mulf %49, %48 : vector<16x128xf32>
    %cst_33 = arith.constant 5.000000e-01 : f32
    %51 = vector.broadcast %cst_33 : f32 to vector<16x128xf32>
    %52 = arith.addf %50, %51 : vector<16x128xf32>
    %c0_34 = arith.constant 0 : index
    %c0_35 = arith.constant 0 : index
    %53 = vector.load %arg14[%c0_34, %c0_35] : memref<16x128xf32, #tpu.memory_space<vmem>>, vector<16x128xf32>
    tpu.vector_store %arg14[%c0_34, %c0_35], %52 {strides = array<i32>} : memref<16x128xf32, #tpu.memory_space<vmem>>, vector<16x128xf32>,
    return
  }
  func.func @transform_0(%arg0: i32) -> (i32, i32) {
    %c0_i32 = arith.constant 0 : i32
    %c0_i32_0 = arith.constant 0 : i32
    return %arg0, %c0_i32 : i32, i32
  }
  func.func @transform_1(%arg0: i32) -> (i32, i32) {
    %c0_i32 = arith.constant 0 : i32
    %c0_i32_0 = arith.constant 0 : i32
    %c0_i32_1 = arith.constant 0 : i32
    return %c0_i32, %c0_i32_0 : i32, i32
  }
  func.func @transform_2(%arg0: i32) -> (i32, i32) {
    %c0_i32 = arith.constant 0 : i32
    %c0_i32_0 = arith.constant 0 : i32
    %c0_i32_1 = arith.constant 0 : i32
    return %c0_i32, %c0_i32_0 : i32, i32
  }
  func.func @transform_3(%arg0: i32) -> (i32, i32) {
    %c0_i32 = arith.constant 0 : i32
    %c0_i32_0 = arith.constant 0 : i32
    %c0_i32_1 = arith.constant 0 : i32
    return %c0_i32, %c0_i32_0 : i32, i32
  }
  func.func @transform_4(%arg0: i32) -> (i32, i32) {
    %c0_i32 = arith.constant 0 : i32
    %c0_i32_0 = arith.constant 0 : i32
    %c0_i32_1 = arith.constant 0 : i32
    return %c0_i32, %c0_i32_0 : i32, i32
  }
  func.func @transform_5(%arg0: i32) -> (i32, i32) {
    %c0_i32 = arith.constant 0 : i32
    %c0_i32_0 = arith.constant 0 : i32
    %c0_i32_1 = arith.constant 0 : i32
    return %c0_i32, %c0_i32_0 : i32, i32
  }
  func.func @transform_6(%arg0: i32) -> (i32, i32) {
    %c0_i32 = arith.constant 0 : i32
    %c0_i32_0 = arith.constant 0 : i32
    %c0_i32_1 = arith.constant 0 : i32
    return %c0_i32, %c0_i32_0 : i32, i32
  }
  func.func @transform_7(%arg0: i32) -> (i32, i32) {
    %c0_i32 = arith.constant 0 : i32
    %c0_i32_0 = arith.constant 0 : i32
    %c0_i32_1 = arith.constant 0 : i32
    return %c0_i32, %c0_i32_0 : i32, i32
  }
  func.func @transform_8(%arg0: i32) -> (i32, i32) {
    %c0_i32 = arith.constant 0 : i32
    %c0_i32_0 = arith.constant 0 : i32
    %c0_i32_1 = arith.constant 0 : i32
    return %c0_i32, %c0_i32_0 : i32, i32
  }
  func.func @transform_9(%arg0: i32) -> (i32, i32) {
    %c0_i32 = arith.constant 0 : i32
    %c0_i32_0 = arith.constant 0 : i32
    %c0_i32_1 = arith.constant 0 : i32
    return %c0_i32, %c0_i32_0 : i32, i32
  }
  func.func @transform_10(%arg0: i32) -> (i32, i32) {
    %c0_i32 = arith.constant 0 : i32
    %c0_i32_0 = arith.constant 0 : i32
    %c0_i32_1 = arith.constant 0 : i32
    return %c0_i32, %c0_i32_0 : i32, i32
  }
  func.func @transform_11(%arg0: i32) -> (i32, i32) {
    %c0_i32 = arith.constant 0 : i32
    %c0_i32_0 = arith.constant 0 : i32
    %c0_i32_1 = arith.constant 0 : i32
    return %c0_i32, %c0_i32_0 : i32, i32
  }
  func.func @transform_12(%arg0: i32) -> (i32, i32) {
    %c0_i32 = arith.constant 0 : i32
    %c0_i32_0 = arith.constant 0 : i32
    %c0_i32_1 = arith.constant 0 : i32
    return %c0_i32, %c0_i32_0 : i32, i32
  }
  func.func @transform_13(%arg0: i32) -> (i32, i32) {
    %c0_i32 = arith.constant 0 : i32
    %c0_i32_0 = arith.constant 0 : i32
    return %arg0, %c0_i32 : i32, i32
  }
}

</mosaic_0001>

<bundles_post_ra>
// kernel: tpu_custom_call.1
= control target key start
LH: loop header
LB: loop body
LE: loop exit
PB: predicated region body
PF: predicated region fallthrough
CT: control target
= control target key end

     0   :  { %18 = vsyncpa [#allocation3], 0  ;;  %s1332_s0 = inlined_call_operand.hbm [shape: bf16[16,64], index: 0, kind: input, shape index: {}]   ;;  %s1333_s1 = inlined_call_operand.hbm [shape: s8[64,512], index: 1, kind: input, shape index: {}]   ;;  %s1334_s2 = inlined_call_operand.vmem [shape: f32[1,512], index: 2, kind: input, shape index: {}]   ;;  %s1335_s3 = inlined_call_operand.hbm [shape: f32[1,512], index: 3, kind: input, shape index: {}]   ;;  %s1336_s4 = inlined_call_operand.hbm [shape: s8[512,256], index: 4, kind: input, shape index: {}]   ;;  %s1337_s5 = inlined_call_operand.hbm [shape: f32[1,256], index: 5, kind: input, shape index: {}]   ;;  %s1338_s6 = inlined_call_operand.hbm [shape: f32[1,256], index: 6, kind: input, shape index: {}]   ;;  %s1339_s7 = inlined_call_operand.hbm [shape: s8[256,128], index: 7, kind: input, shape index: {}]   ;;  %s1340_s8 = inlined_call_operand.vmem [shape: f32[1,128], index: 8, kind: input, shape index: {}]   ;;  %s1341_s9 = inlined_call_operand.hbm [shape: f32[1,128], index: 9, kind: input, shape index: {}]   ;;  %s1342_s10 = inlined_call_operand.vmem [shape: s8[128,128], index: 10, kind: input, shape index: {}]   ;;  %s1343_s11 = inlined_call_operand.vmem [shape: f32[1,128], index: 11, kind: input, shape index: {}]   ;;  %s1344_s12 = inlined_call_operand.vmem [shape: f32[1,128], index: 12, kind: input, shape index: {}]   ;;  %s1345_s13 = inlined_call_operand.hbm [shape: f32[16,128], index: 13, kind: output, shape index: {}]  }
   0x1   :  { %19 = vsyncpa [#allocation6], 0 }
   0x2   :  { %20 = vsyncpa [#allocation9], 0 }
   0x3   :  { %21 = vsyncpa [#allocation12], 0 }
   0x4   :  { %22 = vsyncpa [#allocation15], 0 }
   0x5   :  { %23 = vsyncpa [#allocation4], 0  ;;  %s1045_s25 = smov [#allocation5]   ;;  %s835_s29 = scalar_lea.hbm %s1333_s1, 1024 }
   0x6   :  { %s41_s26 = sshll.u32 %s1045_s25, 4  ;;  %p836_p0 = scmp.ne.s32.totalorder %s1333_s1, %s835_s29  ;;  %s42_s26 = int_to_ptr.vmem [resolvable:$true] %s41_s26 }
   0x7   :  { %p839_p1 = scmp.lt.u32.totalorder %s835_s29, %s1333_s1 }
   0x9   :  { %p841_p2 = pnand %p839_p1, %p836_p0 }
   0xb   :  { %844 = shalt.err (!%p841_p2)
}
   0xc   :  { %s845_s17 = scalar_lea.vmem %s42_s26, 1024  ;;  %p850_p4 = scmp.lt.s32.totalorder %s42_s26, %s42_s26 }
   0xd   :  { %p846_p3 = scmp.ne.s32.totalorder %s42_s26, %s845_s17  ;;  %p851_p5 = scmp.lt.s32.totalorder %s845_s17, %s845_s17 }
   0xf   :  { %p852_p6 = por %p851_p5, %p850_p4 }
  0x11   :  { %p853_p7 = pnand %p852_p6, %p846_p3 }
  0x13   :  { %856 = shalt.err (!%p853_p7)
}
  0x14   :  { %s1046_s18 = smov 512   ;;  %s1047_s19 = smov 32  }
  0x15   :  { %47 = dma.hbm_to_vmem [thread:$0]  %s1333_s1, 1024, %s42_s26, [#allocation6], %s1046_s18, %s1046_s18, %s1047_s19  }
  0x16   :  { %s1048_s22 = smov [#allocation8]   ;;  %s857_s27 = scalar_lea.hbm %s1336_s4, 4096 }
  0x17   :  { %s65_s23 = sshll.u32 %s1048_s22, 4  ;;  %p858_p8 = scmp.ne.s32.totalorder %s1336_s4, %s857_s27  ;;  %s66_s23 = int_to_ptr.vmem [resolvable:$true] %s65_s23 }
  0x18   :  { %p861_p9 = scmp.lt.u32.totalorder %s857_s27, %s1336_s4 }
  0x1a   :  { %p863_p10 = pnand %p861_p9, %p858_p8 }
  0x1c   :  { %866 = shalt.err (!%p863_p10)
}
  0x1d   :  { %s867_s15 = scalar_lea.vmem %s66_s23, 4096  ;;  %p872_p12 = scmp.lt.s32.totalorder %s66_s23, %s66_s23 }
  0x1e   :  { %p868_p11 = scmp.ne.s32.totalorder %s66_s23, %s867_s15  ;;  %p873_p13 = scmp.lt.s32.totalorder %s867_s15, %s867_s15 }
  0x20   :  { %p874_p0 = por %p873_p13, %p872_p12 }
  0x22   :  { %p875_p1 = pnand %p874_p0, %p868_p11 }
  0x24   :  { %878 = shalt.err (!%p875_p1)
}
  0x25   :  { %s1049_s1 = smov 256   ;;  %s1050_s26 = smov 16  }
  0x26   :  { %71 = dma.hbm_to_vmem [thread:$0]  %s1336_s4, 4096, %s66_s23, [#allocation9], %s1049_s1, %s1049_s1, %s1050_s26  }
  0x27   :  { %s1051_s18 = smov [#allocation11]   ;;  %s1052_s20 = smov [#allocation2]  }
  0x28   :  { %s88_s19 = sshll.u32 %s1051_s18, 4  ;;  %s29_s21 = sshll.u32 %s1052_s20, 4  ;;  %s89_s19 = int_to_ptr.vmem [resolvable:$true] %s88_s19  ;;  %s1159_s21 = int_to_ptr.vmem [resolvable:$true] %s29_s21 }
  0x29   :  { %s879_s25 = scalar_lea.hbm %s1338_s6, 32 }
  0x2a   :  { %p880_p2 = scmp.ne.s32.totalorder %s1338_s6, %s879_s25  ;;  %p883_p3 = scmp.lt.u32.totalorder %s879_s25, %s1338_s6 }
  0x2c   :  { %p885_p4 = pnand %p883_p3, %p880_p2 }
  0x2e   :  { %888 = shalt.err (!%p885_p4)
}
  0x2f   :  { %s889_s4 = scalar_lea.vmem %s89_s19, 32  ;;  %p894_p6 = scmp.lt.s32.totalorder %s89_s19, %s89_s19 }
  0x30   :  { %p890_p5 = scmp.ne.s32.totalorder %s89_s19, %s889_s4  ;;  %p895_p7 = scmp.lt.s32.totalorder %s889_s4, %s889_s4 }
  0x32   :  { %p896_p8 = por %p895_p7, %p894_p6 }
  0x34   :  { %p897_p9 = pnand %p896_p8, %p890_p5 }
  0x36   :  { %900 = shalt.err (!%p897_p9)
}
  0x37   :  { %91 = dma.hbm_to_vmem [thread:$0]  %s1338_s6, 32, %s89_s19, [#allocation12]  }
  0x38   :  { %s901_s26 = scalar_lea.hbm %s1332_s0, 128 }
  0x39   :  { %p902_p10 = scmp.ne.s32.totalorder %s1332_s0, %s901_s26  ;;  %p905_p11 = scmp.lt.u32.totalorder %s901_s26, %s1332_s0 }
  0x3b   :  { %p907_p12 = pnand %p905_p11, %p902_p10 }
  0x3d   :  { %910 = shalt.err (!%p907_p12)
}
  0x3e   :  { %s911_s22 = scalar_lea.vmem %s1159_s21, 128  ;;  %p916_p0 = scmp.lt.s32.totalorder %s1159_s21, %s1159_s21 }
  0x3f   :  { %p912_p13 = scmp.ne.s32.totalorder %s1159_s21, %s911_s22  ;;  %p917_p1 = scmp.lt.s32.totalorder %s911_s22, %s911_s22 }
  0x41   :  { %p918_p2 = por %p917_p1, %p916_p0 }
  0x43   :  { %p919_p3 = pnand %p918_p2, %p912_p13 }
  0x45   :  { %922 = shalt.err (!%p919_p3)
}
  0x46   :  { %s1053_s6 = smov 64   ;;  %s1054_s19 = smov 4  }
  0x47   :  { %35 = dma.hbm_to_vmem [thread:$0]  %s1332_s0, 128, %s1159_s21, [#allocation3], %s1053_s6, %s1053_s6, %s1054_s19  }
  0x48   :  { %s1055_s27 = smov [#allocation7]   ;;  %s1056_s29 = smov [#allocation10]  }
  0x49   :  { %s56_s28 = sshll.u32 %s1055_s27, 4  ;;  %s78_s30 = sshll.u32 %s1056_s29, 4  ;;  %s57_s28 = int_to_ptr.vmem [resolvable:$true] %s56_s28  ;;  %s79_s30 = int_to_ptr.vmem [resolvable:$true] %s78_s30 }
  0x4a   :  { %s923_s14 = scalar_lea.hbm %s1335_s3, 64 }
  0x4b   :  { %p924_p4 = scmp.ne.s32.totalorder %s1335_s3, %s923_s14  ;;  %p927_p5 = scmp.lt.u32.totalorder %s923_s14, %s1335_s3 }
  0x4d   :  { %p929_p6 = pnand %p927_p5, %p924_p4 }
  0x4f   :  { %932 = shalt.err (!%p929_p6)
}
  0x50   :  { %s933_s0 = scalar_lea.vmem %s57_s28, 64  ;;  %p938_p8 = scmp.lt.s32.totalorder %s57_s28, %s57_s28 }
  0x51   :  { %p934_p7 = scmp.ne.s32.totalorder %s57_s28, %s933_s0  ;;  %p939_p9 = scmp.lt.s32.totalorder %s933_s0, %s933_s0 }
  0x53   :  { %p940_p10 = por %p939_p9, %p938_p8 }
  0x55   :  { %p941_p11 = pnand %p940_p10, %p934_p7 }
  0x57   :  { %944 = shalt.err (!%p941_p11)
}
  0x58   :  { %59 = dma.hbm_to_vmem [thread:$0]  %s1335_s3, 64, %s57_s28, [#allocation6]  }
  0x59   :  { %s945_s22 = scalar_lea.hbm %s1337_s5, 32 }
  0x5a   :  { %p946_p12 = scmp.ne.s32.totalorder %s1337_s5, %s945_s22  ;;  %p949_p13 = scmp.lt.u32.totalorder %s945_s22, %s1337_s5 }
  0x5c   :  { %p951_p0 = pnand %p949_p13, %p946_p12 }
  0x5e   :  { %954 = shalt.err (!%p951_p0)
}
  0x5f   :  { %s955_s27 = scalar_lea.vmem %s79_s30, 32  ;;  %p960_p2 = scmp.lt.s32.totalorder %s79_s30, %s79_s30 }
  0x60   :  { %p956_p1 = scmp.ne.s32.totalorder %s79_s30, %s955_s27  ;;  %p961_p3 = scmp.lt.s32.totalorder %s955_s27, %s955_s27 }
  0x62   :  { %p962_p4 = por %p961_p3, %p960_p2 }
  0x64   :  { %p963_p5 = pnand %p962_p4, %p956_p1 }
  0x66   :  { %966 = shalt.err (!%p963_p5)
}
  0x67   :  { %81 = dma.hbm_to_vmem [thread:$0]  %s1337_s5, 32, %s79_s30, [#allocation9]  }
  0x68   :  { %s1057_s29 = smov [#allocation13]   ;;  %s967_s15 = scalar_lea.hbm %s1339_s7, 1024 }
  0x69   :  { %s97_s4 = sshll.u32 %s1057_s29, 4  ;;  %p968_p6 = scmp.ne.s32.totalorder %s1339_s7, %s967_s15  ;;  %s98_s4 = int_to_ptr.vmem [resolvable:$true] %s97_s4 }
  0x6a   :  { %p971_p7 = scmp.lt.u32.totalorder %s967_s15, %s1339_s7 }
  0x6c   :  { %p973_p8 = pnand %p971_p7, %p968_p6 }
  0x6e   :  { %976 = shalt.err (!%p973_p8)
}
  0x6f   :  { %s977_s21 = scalar_lea.vmem %s98_s4, 1024  ;;  %p982_p10 = scmp.lt.s32.totalorder %s98_s4, %s98_s4 }
  0x70   :  { %p978_p9 = scmp.ne.s32.totalorder %s98_s4, %s977_s21  ;;  %p983_p11 = scmp.lt.s32.totalorder %s977_s21, %s977_s21 }
  0x72   :  { %p984_p12 = por %p983_p11, %p982_p10 }
  0x74   :  { %p985_p13 = pnand %p984_p12, %p978_p9 }
  0x76   :  { %988 = shalt.err (!%p985_p13)
}
  0x77   :  { %s1058_s5 = smov 128   ;;  %s1059_s30 = smov 8  }
  0x78   :  { %103 = dma.hbm_to_vmem [thread:$0]  %s1339_s7, 1024, %s98_s4, [#allocation12], %s1058_s5, %s1058_s5, %s1059_s30  }
  0x79   :  { %s1060_s20 = smov [#allocation14]   ;;  %s989_s24 = scalar_lea.hbm %s1341_s9, 16 }
  0x7a   :  { %s112_s22 = sshll.u32 %s1060_s20, 4  ;;  %p990_p0 = scmp.ne.s32.totalorder %s1341_s9, %s989_s24  ;;  %s113_s22 = int_to_ptr.vmem [resolvable:$true] %s112_s22 }
  0x7b   :  { %p993_p1 = scmp.lt.u32.totalorder %s989_s24, %s1341_s9 }
  0x7d   :  { %p995_p2 = pnand %p993_p1, %p990_p0 }
  0x7f   :  { %998 = shalt.err (!%p995_p2)
}
  0x80   :  { %s999_s29 = scalar_lea.vmem %s113_s22, 16  ;;  %s1003_s7 = scalar_lea.vmem %s113_s22, 32 }
  0x81   :  { %p1000_p3 = scmp.ne.s32.totalorder %s113_s22, %s999_s29  ;;  %p1004_p4 = scmp.lt.s32.totalorder %s113_s22, %s113_s22 }
  0x82   :  { %p1005_p5 = scmp.lt.s32.totalorder %s1003_s7, %s999_s29 }
  0x84   :  { %p1006_p6 = por %p1005_p5, %p1004_p4 }
  0x86   :  { %p1007_p7 = pnand %p1006_p6, %p1000_p3 }
  0x88   :  { %1010 = shalt.err (!%p1007_p7)
}
  0x89   :  { %115 = dma.hbm_to_vmem [thread:$0]  %s1341_s9, 16, %s113_s22, [#allocation15]  }
  0x8a   :  { %1033 = dma.done.wait [#allocation3], 128  }
  0x8b   :  { %1034 = vsyncadd [#allocation3], 4294967168 }
  0x8c   :  { %1035 = dma.done.wait [#allocation6], 1088  }
  0x8d   :  { %1036 = vsyncadd [#allocation6], 4294966208 }
  0x8e   :  { %1037 = dma.done.wait [#allocation9], 4128  }
  0x8f   :  { %1038 = vsyncadd [#allocation9], 4294963168 }
  0x90   :  { %1039 = dma.done.wait [#allocation12], 1056  }
  0x91   :  { %1040 = vsyncadd [#allocation12], 4294966240 }
  0x92   :  { %1041 = dma.done.wait [#allocation15], 16  }
  0x93   :  { %1042 = vsyncadd [#allocation15], 4294967280  ;;  %v1061_v0 = vmov 0   ;;  %v150_v1 = vld [vmem:[#allocation5 + $0x8] sm:$0xff]  ;;  %v149_v2 = vld [vmem:[#allocation5] sm:$0xff]  ;;  %vm178_vm0 = vcmask 523264  }
  0x94   :  { %214 = vmatprep.mubr.bf16.mxu1 %v1061_v0  ;;  %v158_v3 = vunpack.c.l.s8.bf16 %v150_v1  ;;  %v162_v4 = vunpack.c.h.s8.bf16 %v150_v1  ;;  %v157_v5 = vunpack.c.l.s8.bf16 %v149_v2  ;;  %v154_v6 = vld [vmem:[#allocation5 + $0x28] sm:$0xff]  ;;  %v161_v8 = vunpack.c.h.s8.bf16 %v149_v2  ;;  %v153_v11 = vld [vmem:[#allocation5 + $0x20] sm:$0xff]  ;;  %v342_v20 = vld [vmem:[#allocation8 + $0x10] sm:$0xff] }
  0x95   :  { %v341_v7 = vld [vmem:[#allocation8 + $0x8] sm:$0xff]  ;;  %v340_v9 = vld [vmem:[#allocation8] sm:$0xff]  ;;  %v166_v10 = vunpack.c.l.s8.bf16 %v154_v6  ;;  %v343_v15 = vld [vmem:[#allocation8 + $0x18] sm:$0xff]  ;;  %v165_v16 = vunpack.c.l.s8.bf16 %v153_v11  ;;  %v170_v18 = vunpack.c.h.s8.bf16 %v154_v6  ;;  %v169_v22 = vunpack.c.h.s8.bf16 %v153_v11 }
  0x96   :  { %182 = vmatprep.subr.bf16.mxu1 %v158_v3  ;;  %v373_v12 = vunpack.c.l.s8.bf16 %v341_v7  ;;  %v375_v13 = vunpack.c.h.s8.bf16 %v341_v7  ;;  %v372_v14 = vunpack.c.l.s8.bf16 %v340_v9  ;;  %v374_v17 = vunpack.c.h.s8.bf16 %v340_v9  ;;  %v152_v21 = vld [vmem:[#allocation5 + $0x18] sm:$0xff]  ;;  %v151_v25 = vld [vmem:[#allocation5 + $0x10] sm:$0xff]  ;;  %v344_v34 = vld [vmem:[#allocation8 + $0x20] sm:$0xff] }
  0x97   :  { %183 = vmatpush1.bf16.msra.mxu1 %v157_v5  ;;  %v377_v19 = vunpack.c.l.s8.bf16 %v343_v15  ;;  %v376_v23 = vunpack.c.l.s8.bf16 %v342_v20  ;;  %v160_v24 = vunpack.c.l.s8.bf16 %v152_v21  ;;  %v379_v26 = vunpack.c.h.s8.bf16 %v343_v15  ;;  %v830_v27 = vld [vmem:[#allocation2] sm:$0xff]   ;;  %v345_v28 = vld [vmem:[#allocation8 + $0x28] sm:$0xff]  ;;  %v348_v52 = vld [vmem:[#allocation8 + $0x40] sm:$0xff] }
  0x98   :  { %184 = vmatprep.subr.bf16.mxu1 %v162_v4  ;;  %436 = vmatprep.subr.bf16.mxu0 %v373_v12  ;;  %v159_v29 = vunpack.c.l.s8.bf16 %v151_v25  ;;  %v164_v30 = vunpack.c.h.s8.bf16 %v152_v21  ;;  %v378_v31 = vunpack.c.h.s8.bf16 %v342_v20  ;;  %v156_v32 = vld [vmem:[#allocation5 + $0x38] sm:$0xff]  ;;  %v381_v33 = vunpack.c.l.s8.bf16 %v345_v28  ;;  %v155_v37 = vld [vmem:[#allocation5 + $0x30] sm:$0xff]  ;;  %v560_v20 = vld [vmem:[#allocation13] sm:$0xff] }
  0x99   :  { %437 = vmatpush1.bf16.msra.mxu0 %v372_v14  ;;  %v163_v35 = vunpack.c.h.s8.bf16 %v151_v25  ;;  %v168_v36 = vunpack.c.l.s8.bf16 %v156_v32  ;;  %v380_v38 = vunpack.c.l.s8.bf16 %v344_v34  ;;  %v383_v39 = vunpack.c.h.s8.bf16 %v345_v28  ;;  %v347_v40 = vld [vmem:[#allocation8 + $0x38] sm:$0xff]  ;;  %v346_v45 = vld [vmem:[#allocation8 + $0x30] sm:$0xff]  ;;  %v349_v49 = vld [vmem:[#allocation8 + $0x48] sm:$0xff] }
  0x9a   :  { %438 = vmatprep.subr.bf16.mxu0 %v375_v13  ;;  %v167_v41 = vunpack.c.l.s8.bf16 %v155_v37  ;;  %v172_v42 = vunpack.c.h.s8.bf16 %v156_v32  ;;  %v382_v43 = vunpack.c.h.s8.bf16 %v344_v34  ;;  %v385_v44 = vunpack.c.l.s8.bf16 %v347_v40  ;;  %v351_v55 = vld [vmem:[#allocation8 + $0x58] sm:$0xff]  ;;  %v350_v58 = vld [vmem:[#allocation8 + $0x50] sm:$0xff]  ;;  %v353_v61 = vld [vmem:[#allocation8 + $0x68] sm:$0xff] }
  0x9b   :  { %185 = vmatpush1.bf16.msra.mxu1 %v161_v8  ;;  %v171_v46 = vunpack.c.h.s8.bf16 %v155_v37  ;;  %v384_v47 = vunpack.c.l.s8.bf16 %v346_v45  ;;  %v387_v48 = vunpack.c.h.s8.bf16 %v347_v40  ;;  %v386_v50 = vunpack.c.h.s8.bf16 %v346_v45  ;;  %v355_v4 = vld [vmem:[#allocation8 + $0x78] sm:$0xff]  ;;  %v354_v6 = vld [vmem:[#allocation8 + $0x70] sm:$0xff] }
  0x9c   :  { %186 = vmatprep.subr.bf16.mxu1 %v166_v10  ;;  %v389_v51 = vunpack.c.l.s8.bf16 %v349_v49  ;;  %v388_v53 = vunpack.c.l.s8.bf16 %v348_v52  ;;  %v391_v54 = vunpack.c.h.s8.bf16 %v349_v49  ;;  %v390_v56 = vunpack.c.h.s8.bf16 %v348_v52  ;;  %v1243_v10 = vld [vmem:[#allocation8 + $0x88] sm:$0xff]  ;;  %v1252_v15 = vld [vmem:[%s1334_s2] sm:$0xf] }
  0x9d   :  { %439 = vmatpush1.bf16.msra.mxu0 %v374_v17  ;;  %v393_v57 = vunpack.c.l.s8.bf16 %v351_v55  ;;  %v392_v59 = vunpack.c.l.s8.bf16 %v350_v58  ;;  %v395_v60 = vunpack.c.h.s8.bf16 %v351_v55  ;;  %v394_v62 = vunpack.c.h.s8.bf16 %v350_v58  ;;  %v356_v55 = vld [vmem:[#allocation8 + $0x80] sm:$0xff] }
  0x9e   :  { %440 = vmatprep.subr.bf16.mxu0 %v377_v19  ;;  %v397_v63 = vunpack.c.l.s8.bf16 %v353_v61  ;;  %v399_v2 = vunpack.c.h.s8.bf16 %v353_v61  ;;  %v401_v5 = vunpack.c.l.s8.bf16 %v355_v4  ;;  %v400_v7 = vunpack.c.l.s8.bf16 %v354_v6  ;;  %v564_v19 = vld [vmem:[#allocation13 + $0x20] sm:$0xff] }
  0x9f   :  { %187 = vmatpush1.bf16.msra.mxu1 %v165_v16  ;;  %v403_v8 = vunpack.c.h.s8.bf16 %v355_v4  ;;  %v402_v9 = vunpack.c.h.s8.bf16 %v354_v6  ;;  %v405_v11 = vunpack.c.l.s8.bf16 %v1243_v10  ;;  %v270_v12 = vlaneseq  ;;  %v1254_v16 = vld [vmem:[#allocation7] sm:$0xf] }
  0xa0   :  { %188 = vmatprep.subr.bf16.mxu1 %v170_v18  ;;  %v576_v21 = vunpack.c.l.s8.bf16 %v564_v19  ;;  %v569_v25 = vunpack.c.h.s8.bf16 %v560_v20  ;;  %vm1063_vm1 = vmmov 0  }
  0xa1   :  { %441 = vmatpush1.bf16.msra.mxu0 %v376_v23  ;;  %v1246_v13 = vshrl.u32 %v270_v12, 7  ;;  %v577_v23 = vunpack.c.h.s8.bf16 %v564_v19 }
  0xa2   :  { %442 = vmatprep.subr.bf16.mxu0 %v379_v26 }
  0xa3   :  { %189 = vmatpush1.bf16.msra.mxu1 %v169_v22  ;;  %v280_v14 = vsub.s32 2, %v1246_v13  ;;  %v568_v22 = vunpack.c.l.s8.bf16 %v560_v20  ;;  %v284_v61 = vsub.s32 3, %v1246_v13 }
  0xa4   :  { %225 = vmatprep.subr.bf16.mxu1 %v160_v24  ;;  %v565_v24 = vld [vmem:[#allocation13 + $0x28] sm:$0xff] }
  0xa5   :  { %443 = vmatpush1.bf16.msra.mxu0 %v378_v31  ;;  %v1257_v17 = vrot.slane %v1252_v15, %v280_v14  ;;  %v1260_v18 = vrot.slane %v1254_v16, %v280_v14  ;;  %v578_v26 = vunpack.c.l.s8.bf16 %v565_v24 }
  0xa6   :  { %749 = vmatmul.mubr.msk.bf16.vlgmr.msra.gmra.mrb[0].mxu1 %vm178_vm0, %v830_v27  ;;  %444 = vmatprep.subr.bf16.mxu0 %v381_v33  ;;  %v1265_v33 = vld [vmem:[#allocation13 + $0x10] sm:$0xff] }
  0xa7   :  { %226 = vmatpush1.bf16.msra.mxu1 %v159_v29  ;;  %257 = vmatprep.mubr.bf16.mxu1 %v1061_v0  ;;  %v352_v0 = vld [vmem:[#allocation8 + $0x60] sm:$0xff]  ;;  %v579_v29 = vunpack.c.h.s8.bf16 %v565_v24  ;;  %v572_v34 = vunpack.c.l.s8.bf16 %v1265_v33 }
  0xa8   :  { %227 = vmatprep.subr.bf16.mxu1 %v164_v30  ;;  %v396_v1 = vunpack.c.l.s8.bf16 %v352_v0  ;;  %v398_v3 = vunpack.c.h.s8.bf16 %v352_v0  ;;  %v1262_v30 = vld [vmem:[#allocation13 + $0x30] sm:$0xff]  ;;  %v406_v0 = vunpack.c.h.s8.bf16 %v356_v55 }
  0xa9   :  { %445 = vmatpush1.bf16.msra.mxu0 %v380_v38  ;;  %v580_v32 = vunpack.c.l.s8.bf16 %v1262_v30 }
  0xaa   :  { %446 = vmatprep.subr.bf16.mxu0 %v383_v39 }
  0xab   :  { %228 = vmatpush1.bf16.msra.mxu1 %v163_v35  ;;  %v1269_v35 = vsub.s32 0, %v1246_v13 }
  0xac   :  { %229 = vmatprep.subr.bf16.mxu1 %v168_v36  ;;  %v1272_v36 = vsub.s32 1, %v1246_v13 }
  0xad   :  { %447 = vmatpush1.bf16.msra.mxu0 %v382_v43  ;;  %v273_v37 = vrot.slane %v1252_v15, %v1269_v35  ;;  %v303_v39 = vrot.slane %v1254_v16, %v1269_v35 }
  0xae   :  { %448 = vmatprep.subr.bf16.mxu0 %v385_v44  ;;  %v277_v38 = vrot.slane %v1252_v15, %v1272_v36 }
  0xaf   :  { %230 = vmatpush1.bf16.msra.mxu1 %v167_v41  ;;  %v307_v41 = vrot.slane %v1254_v16, %v1272_v36 }
  0xb0   :  { %231 = vmatprep.subr.bf16.mxu1 %v172_v42 }
  0xb1   :  { %449 = vmatpush1.bf16.msra.mxu0 %v384_v47 }
  0xb2   :  { %450 = vmatprep.subr.bf16.mxu0 %v387_v48 }
  0xb3   :  { %232 = vmatpush1.bf16.msra.mxu1 %v171_v46 }
  0xb4   :  { %755 = vmatprep.subr.bf16.mxu1 %v576_v21 }
  0xb5   :  { %451 = vmatpush1.bf16.msra.mxu0 %v386_v50 }
  0xb6   :  { %750 = vmatmul.mubr.msk.bf16.vlgmr.msra.gmra.mrb[4].mxu1 %vm178_vm0, %v830_v27  ;;  %452 = vmatprep.subr.bf16.mxu0 %v389_v51  ;;  %v561_v27 = vld [vmem:[#allocation13 + $0x8] sm:$0xff] }
  0xb7   :  { %756 = vmatpush3.bf16.msra.mxu1 %v568_v22  ;;  %v570_v28 = vunpack.c.l.s8.bf16 %v561_v27  ;;  %v571_v31 = vunpack.c.h.s8.bf16 %v561_v27 }
  0xb8   :  { %757 = vmatprep.subr.bf16.mxu1 %v577_v23 }
  0xb9   :  { %453 = vmatpush1.bf16.msra.mxu0 %v388_v53 }
  0xba   :  { %454 = vmatprep.subr.bf16.mxu0 %v391_v54 }
  0xbb   :  { %758 = vmatpush3.bf16.msra.mxu1 %v569_v25 }
  0xbc   :  { %759 = vmatprep.subr.bf16.mxu1 %v578_v26  ;;  %v360_v26 = vld [vmem:[#allocation8 + $0xa0] sm:$0xff] }
  0xbd   :  { %455 = vmatpush1.bf16.msra.mxu0 %v390_v56 }
  0xbe   :  { %456 = vmatprep.subr.bf16.mxu0 %v393_v57 }
  0xbf   :  { %760 = vmatpush3.bf16.msra.mxu1 %v570_v28 }
  0xc0   :  { %761 = vmatprep.subr.bf16.mxu1 %v579_v29 }
  0xc1   :  { %457 = vmatpush1.bf16.msra.mxu0 %v392_v59 }
  0xc2   :  { %458 = vmatprep.subr.bf16.mxu0 %v395_v60  ;;  %v404_v60 = vunpack.c.l.s8.bf16 %v356_v55 }
  0xc3   :  { %762 = vmatpush3.bf16.msra.mxu1 %v571_v31  ;;  %v412_v31 = vunpack.c.l.s8.bf16 %v360_v26 }
  0xc4   :  { %763 = vmatprep.subr.bf16.mxu1 %v580_v32 }
  0xc5   :  { %459 = vmatpush1.bf16.msra.mxu0 %v394_v62  ;;  %v407_v62 = vunpack.c.h.s8.bf16 %v1243_v10 }
  0xc6   :  { %460 = vmatprep.subr.bf16.mxu0 %v397_v63  ;;  %v359_v63 = vld [vmem:[#allocation8 + $0x98] sm:$0xff] }
  0xc7   :  { %764 = vmatpush3.bf16.msra.mxu1 %v572_v34  ;;  %v363_v34 = vld [vmem:[#allocation8 + $0xb8] sm:$0xff] }
  0xc9   :  { %461 = vmatpush1.bf16.msra.mxu0 %v396_v1  ;;  %v285_v1 = vrot.slane %v1252_v15, %v284_v61  ;;  %v361_v15 = vld [vmem:[#allocation8 + $0xa8] sm:$0xff] }
  0xca   :  { %462 = vmatprep.subr.bf16.mxu0 %v399_v2  ;;  %v409_v2 = vunpack.c.l.s8.bf16 %v359_v63  ;;  %v413_v25 = vunpack.c.l.s8.bf16 %v361_v15  ;;  %v415_v32 = vunpack.c.h.s8.bf16 %v361_v15 }
  0xcd   :  { %463 = vmatpush1.bf16.msra.mxu0 %v398_v3  ;;  %v358_v3 = vld [vmem:[#allocation8 + $0x90] sm:$0xff] }
  0xce   :  { %464 = vmatprep.subr.bf16.mxu0 %v401_v5  ;;  %v315_v5 = vrot.slane %v1254_v16, %v284_v61  ;;  %v410_v22 = vunpack.c.h.s8.bf16 %v358_v3 }
  0xd1   :  { %465 = vmatpush1.bf16.msra.mxu0 %v400_v7 }
  0xd2   :  { %466 = vmatprep.subr.bf16.mxu0 %v403_v8  ;;  %v408_v8 = vunpack.c.l.s8.bf16 %v358_v3  ;;  %v573_v3 = vunpack.c.h.s8.bf16 %v1265_v33 }
  0xd5   :  { %467 = vmatpush1.bf16.msra.mxu0 %v402_v9 }
  0xd6   :  { %479 = vmatprep.subr.bf16.mxu0 %v405_v11  ;;  %v411_v11 = vunpack.c.h.s8.bf16 %v359_v63 }
 0x179   :  { %v216_v40 = vpop.f32.mrb[0].mxu1 }
 0x17a   :  { %v290_v42 = vmul.f32 %v273_v37, %v216_v40  ;;  %v218_v43 = vpop.f32.mrb[1].mxu1  ;;  %v419_v40 = vunpack.c.h.s8.bf16 %v363_v34 }
 0x17b   :  { %v291_v44 = vmul.f32 %v277_v38, %v218_v43  ;;  %v220_v45 = vpop.f32.mrb[2].mxu1 }
 0x17c   :  { %v320_v46 = vadd.f32 %v303_v39, %v290_v42  ;;  %v294_v47 = vmul.f32 %v273_v37, %v220_v45  ;;  %v222_v48 = vpop.f32.mrb[3].mxu1  ;;  %v414_v37 = vunpack.c.h.s8.bf16 %v360_v26 }
 0x17d   :  { %v295_v49 = vmul.f32 %v277_v38, %v222_v48  ;;  %v321_v50 = vadd.f32 %v307_v41, %v291_v44  ;;  %v362_v38 = vld [vmem:[#allocation8 + $0xb0] sm:$0xff]  ;;  %v364_v44 = vld [vmem:[#allocation8 + $0xc0] sm:$0xff] }
 0x17e   :  { %v324_v51 = vadd.f32 %v303_v39, %v294_v47  ;;  %v328_v53 = vmax.f32 %v320_v46, 0.0  ;;  %v416_v39 = vunpack.c.l.s8.bf16 %v362_v38  ;;  %v418_v42 = vunpack.c.h.s8.bf16 %v362_v38  ;;  %v367_v47 = vld [vmem:[#allocation8 + $0xd8] sm:$0xff] }
 0x17f   :  { %v325_v52 = vadd.f32 %v307_v41, %v295_v49  ;;  %v329_v56 = vmax.f32 %v321_v50, 0.0  ;;  %v365_v41 = vld [vmem:[#allocation8 + $0xc8] sm:$0xff]  ;;  %v420_v45 = vunpack.c.l.s8.bf16 %v364_v44  ;;  %v422_v48 = vunpack.c.h.s8.bf16 %v364_v44  ;;  %v366_v50 = vld [vmem:[#allocation8 + $0xd0] sm:$0xff]  ;;  %v647_v38 = vld [vmem:[%s1342_s10 + $0x8] sm:$0xff] }
 0x180   :  { %v332_v54 = vmax.f32 %v324_v51, 0.0  ;;  %v421_v43 = vunpack.c.l.s8.bf16 %v365_v41  ;;  %v423_v46 = vunpack.c.h.s8.bf16 %v365_v41  ;;  %v425_v49 = vunpack.c.l.s8.bf16 %v367_v47  ;;  %v648_v41 = vld [vmem:[%s1342_s10 + $0x10] sm:$0xff]  ;;  %v649_v44 = vld [vmem:[%s1342_s10 + $0x18] sm:$0xff] }
 0x181   :  { %v333_v57 = vmax.f32 %v325_v52, 0.0  ;;  %v424_v51 = vunpack.c.l.s8.bf16 %v366_v50  ;;  %v427_v52 = vunpack.c.h.s8.bf16 %v367_v47 }
 0x182   :  { %v336_v58 = vpack.c.bf16 %v332_v54, %v328_v53  ;;  %v369_v53 = vld [vmem:[#allocation8 + $0xe8] sm:$0xff]  ;;  %v426_v54 = vunpack.c.h.s8.bf16 %v366_v50 }
 0x183   :  { %v337_v59 = vpack.c.bf16 %v333_v57, %v329_v56  ;;  %v429_v55 = vunpack.c.l.s8.bf16 %v369_v53  ;;  %v368_v56 = vld [vmem:[#allocation8 + $0xe0] sm:$0xff] }
 0x184   :  { %v428_v57 = vunpack.c.l.s8.bf16 %v368_v56 }
 0x185   :  { %468 = vmatprep.mubr.bf16.mxu0 %v337_v59  ;;  %v371_v59 = vld [vmem:[#allocation8 + $0xf8] sm:$0xff] }
 0x186   :  { %469 = vmatmul.mubr.bf16.vlgmr.msra.gmra.mrb[0].mxu0 %v336_v58  ;;  %v431_v58 = vunpack.c.h.s8.bf16 %v369_v53  ;;  %v433_v61 = vunpack.c.l.s8.bf16 %v371_v59 }
 0x187   :  { %480 = vmatpush1.bf16.msra.mxu0 %v404_v60  ;;  %v430_v60 = vunpack.c.h.s8.bf16 %v368_v56 }
 0x188   :  { %481 = vmatprep.subr.bf16.mxu0 %v407_v62  ;;  %v370_v62 = vld [vmem:[#allocation8 + $0xf0] sm:$0xff] }
 0x189   :  { %v259_v4 = vpop.f32.mrb[4].mxu1  ;;  %v432_v63 = vunpack.c.l.s8.bf16 %v370_v62 }
 0x18a   :  { %v292_v6 = vmul.f32 %v1257_v17, %v259_v4  ;;  %v261_v7 = vpop.f32.mrb[5].mxu1  ;;  %v567_v4 = vld [vmem:[#allocation13 + $0x38] sm:$0xff] }
 0x18b   :  { %482 = vmatpush1.bf16.msra.mxu0 %v406_v0  ;;  %v293_v9 = vmul.f32 %v285_v1, %v261_v7  ;;  %v263_v10 = vpop.f32.mrb[6].mxu1  ;;  %v435_v0 = vunpack.c.h.s8.bf16 %v371_v59 }
 0x18c   :  { %483 = vmatprep.subr.bf16.mxu0 %v409_v2  ;;  %v322_v12 = vadd.f32 %v1260_v18, %v292_v6  ;;  %v296_v13 = vmul.f32 %v1257_v17, %v263_v10  ;;  %v265_v14 = vpop.f32.mrb[7].mxu1  ;;  %v581_v2 = vunpack.c.h.s8.bf16 %v1262_v30  ;;  %v563_v6 = vld [vmem:[#allocation13 + $0x18] sm:$0xff]  ;;  %v1062_v10 = vmov 0.0  }
 0x18d   :  { %v323_v19 = vadd.f32 %v315_v5, %v293_v9  ;;  %v297_v20 = vmul.f32 %v285_v1, %v265_v14  ;;  %v434_v1 = vunpack.c.h.s8.bf16 %v370_v62  ;;  %v574_v7 = vunpack.c.l.s8.bf16 %v563_v6  ;;  %v753_v62 = vld [vmem:[%s1343_s11] ss:$0 sm:$0xff]  ;;  %s1064_s11 = smov [#allocation16]  }
 0x18e   :  { %v330_v21 = vmax.f32 %v322_v12, 0.0  ;;  %v326_v16 = vadd.f32 %v1260_v18, %v296_v13  ;;  %v417_v18 = vunpack.c.l.s8.bf16 %v363_v34  ;;  %765 = vmatprep.subr.bf16.mxu1 %v581_v2  ;;  %v575_v9 = vunpack.c.h.s8.bf16 %v563_v6  ;;  %v538_v12 = vld [vmem:[#allocation11] sm:$0x3]  ;;  %s732_s19 = sshll.u32 %s1064_s11, 4  ;;  %s733_s19 = int_to_ptr.vmem [resolvable:$true] %s732_s19 }
 0x18f   :  { %484 = vmatpush1.bf16.msra.mxu0 %v408_v8  ;;  %v331_v23 = vmax.f32 %v323_v19, 0.0  ;;  %v327_v24 = vadd.f32 %v315_v5, %v297_v20  ;;  %766 = vmatpush3.bf16.msra.mxu1 %v573_v3  ;;  %v582_v5 = vunpack.c.l.s8.bf16 %v567_v4  ;;  %v583_v8 = vunpack.c.h.s8.bf16 %v567_v4  ;;  %p1016_p9 = scmp.lt.s32.totalorder %s733_s19, %s733_s19 }
 0x190   :  { %485 = vmatprep.subr.bf16.mxu0 %v411_v11  ;;  %v334_v27 = vmax.f32 %v326_v16, 0.0  ;;  %v522_v11 = vld [vmem:[#allocation10] sm:$0x3]  ;;  %v543_v13 = vrot.slane %v538_v12, %v1269_v35  ;;  %v547_v15 = vrot.slane %v538_v12, %v1272_v36 }
 0x191   :  { %v335_v28 = vmax.f32 %v327_v24, 0.0  ;;  %767 = vmatprep.subr.bf16.mxu1 %v582_v5  ;;  %v527_v30 = vrot.slane %v522_v11, %v1269_v35  ;;  %v531_v33 = vrot.slane %v522_v11, %v1272_v36  ;;  %v646_v35 = vld [vmem:[%s1342_s10] sm:$0xff] }
 0x192   :  { %v338_v29 = vpack.c.bf16 %v334_v27, %v330_v21 }
 0x193   :  { %486 = vmatpush1.bf16.msra.mxu0 %v410_v22  ;;  %v339_v17 = vpack.c.bf16 %v335_v28, %v331_v23  ;;  %768 = vmatpush3.bf16.msra.mxu1 %v574_v7 }
 0x194   :  { %487 = vmatprep.subr.bf16.mxu0 %v413_v25  ;;  %769 = vmatprep.subr.bf16.mxu1 %v583_v8 }
 0x195   :  { %511 = vmatprep.mubr.bf16.mxu0 %v339_v17 }
 0x197   :  { %488 = vmatpush1.bf16.msra.mxu0 %v412_v31  ;;  %770 = vmatpush3.bf16.msra.mxu1 %v575_v9 }
 0x198   :  { %489 = vmatprep.subr.bf16.mxu0 %v415_v32  ;;  %786 = vmatprep.subr.bf16.mxu1 %v1062_v10 }
 0x19b   :  { %490 = vmatpush1.bf16.msra.mxu0 %v414_v37  ;;  %v650_v37 = vunpack.c.l.s8.bf16 %v646_v35 }
 0x19c   :  { %491 = vmatprep.subr.bf16.mxu0 %v417_v18  ;;  %v651_v18 = vunpack.c.h.s8.bf16 %v646_v35 }
 0x19f   :  { %492 = vmatpush1.bf16.msra.mxu0 %v416_v39  ;;  %v652_v39 = vunpack.c.l.s8.bf16 %v647_v38 }
 0x1a0   :  { %493 = vmatprep.subr.bf16.mxu0 %v419_v40  ;;  %v653_v40 = vunpack.c.h.s8.bf16 %v647_v38 }
 0x1a3   :  { %494 = vmatpush1.bf16.msra.mxu0 %v418_v42  ;;  %v654_v42 = vunpack.c.l.s8.bf16 %v648_v41 }
 0x1a4   :  { %495 = vmatprep.subr.bf16.mxu0 %v421_v43  ;;  %v655_v43 = vunpack.c.h.s8.bf16 %v648_v41 }
 0x1a7   :  { %496 = vmatpush1.bf16.msra.mxu0 %v420_v45  ;;  %v656_v45 = vunpack.c.l.s8.bf16 %v649_v44 }
 0x1a8   :  { %497 = vmatprep.subr.bf16.mxu0 %v423_v46  ;;  %v657_v46 = vunpack.c.h.s8.bf16 %v649_v44 }
 0x1ab   :  { %498 = vmatpush1.bf16.msra.mxu0 %v422_v48 }
 0x1ac   :  { %499 = vmatprep.subr.bf16.mxu0 %v425_v49  ;;  %v751_v49 = vld [vmem:[%s1340_s8] ss:$0 sm:$0xff] }
 0x1af   :  { %500 = vmatpush1.bf16.msra.mxu0 %v424_v51 }
 0x1b0   :  { %501 = vmatprep.subr.bf16.mxu0 %v427_v52  ;;  %v752_v52 = vld [vmem:[#allocation14] ss:$0 sm:$0xff] }
 0x1b3   :  { %502 = vmatpush1.bf16.msra.mxu0 %v426_v54 }
 0x1b4   :  { %503 = vmatprep.subr.bf16.mxu0 %v429_v55 }
 0x1b7   :  { %504 = vmatpush1.bf16.msra.mxu0 %v428_v57 }
 0x1b8   :  { %505 = vmatprep.subr.bf16.mxu0 %v431_v58 }
 0x1bb   :  { %506 = vmatpush1.bf16.msra.mxu0 %v430_v60 }
 0x1bc   :  { %507 = vmatprep.subr.bf16.mxu0 %v433_v61 }
 0x1bf   :  { %508 = vmatpush1.bf16.msra.mxu0 %v432_v63 }
 0x1c0   :  { %509 = vmatprep.subr.bf16.mxu0 %v435_v0  ;;  %v754_v0 = vld [vmem:[%s1344_s12] ss:$0 sm:$0xff]  ;;  %s1011_s12 = scalar_lea.vmem %s733_s19, 256 }
 0x1c1   :  { %p1012_p8 = scmp.ne.s32.totalorder %s733_s19, %s1011_s12  ;;  %p1017_p10 = scmp.lt.s32.totalorder %s1011_s12, %s1011_s12 }
 0x1c3   :  { %510 = vmatpush1.bf16.msra.mxu0 %v434_v1  ;;  %p1018_p11 = por %p1017_p10, %p1016_p9 }
 0x1c5   :  { %p1019_p12 = pnand %p1018_p11, %p1012_p8 }
 0x1c6   :  { %512 = vmatmul.mubr.bf16.vlgmr.msra.gmra.mrb[0].mxu0 %v338_v29 }
 0x299   :  { %v513_v14 = vpop.f32.mrb[0].mxu0 }
 0x29a   :  { %v534_v19 = vmul.f32 %v527_v30, %v513_v14  ;;  %v515_v20 = vpop.f32.mrb[1].mxu0 }
 0x29b   :  { %v535_v21 = vmul.f32 %v531_v33, %v515_v20  ;;  %v517_v16 = vpop.f32.mrb[2].mxu0 }
 0x29c   :  { %v550_v22 = vadd.f32 %v543_v13, %v534_v19  ;;  %v536_v23 = vmul.f32 %v527_v30, %v517_v16  ;;  %v519_v24 = vpop.f32.mrb[3].mxu0 }
 0x29d   :  { %v551_v25 = vadd.f32 %v547_v15, %v535_v21  ;;  %v537_v26 = vmul.f32 %v531_v33, %v519_v24 }
 0x29e   :  { %v552_v27 = vadd.f32 %v543_v13, %v536_v23  ;;  %v554_v29 = vmax.f32 %v550_v22, 0.0 }
 0x29f   :  { %v553_v28 = vadd.f32 %v547_v15, %v537_v26  ;;  %v555_v17 = vmax.f32 %v551_v25, 0.0 }
 0x2a0   :  { %v556_v31 = vmax.f32 %v552_v27, 0.0 }
 0x2a1   :  { %v557_v32 = vmax.f32 %v553_v28, 0.0 }
 0x2a2   :  { %v558_v36 = vpack.c.bf16 %v556_v31, %v554_v29 }
 0x2a3   :  { %v559_v34 = vpack.c.bf16 %v557_v32, %v555_v17 }
 0x2a5   :  { %616 = vmatprep.mubr.bf16.mxu1 %v559_v34 }
 0x2a6   :  { %617 = vmatmul.mubr.bf16.vlgmr.msra.gmra.mrb[8].mxu1 %v558_v36 }
 0x2a7   :  { %787 = vmatpush3.bf16.msra.mxu1 %v650_v37  ;;  %802 = vmatprep.mubr.msk.bf16.mxu1 %vm1063_vm1, %v1062_v10 }
 0x2a8   :  { %788 = vmatprep.subr.bf16.mxu1 %v1062_v10 }
 0x2ab   :  { %789 = vmatpush3.bf16.msra.mxu1 %v651_v18 }
 0x2ac   :  { %790 = vmatprep.subr.bf16.mxu1 %v1062_v10 }
 0x2af   :  { %791 = vmatpush3.bf16.msra.mxu1 %v652_v39 }
 0x2b0   :  { %792 = vmatprep.subr.bf16.mxu1 %v1062_v10 }
 0x2b3   :  { %793 = vmatpush3.bf16.msra.mxu1 %v653_v40 }
 0x2b4   :  { %794 = vmatprep.subr.bf16.mxu1 %v1062_v10 }
 0x2b7   :  { %795 = vmatpush3.bf16.msra.mxu1 %v654_v42 }
 0x2b8   :  { %796 = vmatprep.subr.bf16.mxu1 %v1062_v10 }
 0x2bb   :  { %797 = vmatpush3.bf16.msra.mxu1 %v655_v43 }
 0x2bc   :  { %798 = vmatprep.subr.bf16.mxu1 %v1062_v10 }
 0x2bf   :  { %799 = vmatpush3.bf16.msra.mxu1 %v656_v45 }
 0x2c0   :  { %800 = vmatprep.subr.bf16.mxu1 %v1062_v10 }
 0x2c3   :  { %801 = vmatpush3.bf16.msra.mxu1 %v657_v46 }
 0x379   :  { %v771_v47 = vpop.f32.mrb[8].mxu1 }
 0x37a   :  { %v772_v48 = vpop.f32.mrb[9].mxu1 }
 0x37b   :  { %v773_v50 = vadd.f32 %v772_v48, %v771_v47  ;;  %v774_v51 = vpop.f32.mrb[10].mxu1 }
 0x37c   :  { %v775_v53 = vpop.f32.mrb[11].mxu1 }
 0x37d   :  { %v632_v54 = vmul.f32 %v773_v50, %v751_v49  ;;  %v776_v55 = vadd.f32 %v775_v53, %v774_v51 }
 0x37f   :  { %v641_v56 = vadd.f32 %v752_v52, %v632_v54  ;;  %v633_v57 = vmul.f32 %v776_v55, %v751_v49 }
 0x381   :  { %v642_v58 = vadd.f32 %v752_v52, %v633_v57  ;;  %v643_v59 = vmax.f32 %v641_v56, 0.0 }
 0x383   :  { %v644_v60 = vmax.f32 %v642_v58, 0.0 }
 0x385   :  { %v645_v61 = vpack.c.bf16 %v644_v60, %v643_v59 }
 0x387   :  { %803 = vmatmul.mubr.bf16.vlgmr.msra.gmra.mrb[12].mxu1 %v645_v61 }
 0x45a   :  { %v692_v63 = vpop.f32.mrb[12].mxu1 }
 0x45b   :  { %v706_v1 = vmul.f32 %v753_v62, %v692_v63  ;;  %v804_v2 = vpop.f32.mrb[13].mxu1 }
 0x45c   :  { %v695_v3 = vpop.f32.mrb[14].mxu1 }
 0x45d   :  { %v715_v4 = vadd.f32 %v754_v0, %v706_v1  ;;  %v707_v5 = vmul.f32 %v753_v62, %v695_v3  ;;  %v805_v6 = vpop.f32.mrb[15].mxu1 }
 0x45f   :  { %v717_v7 = vmul.f32 0.5, %v715_v4  ;;  %v716_v8 = vadd.f32 %v754_v0, %v707_v5 }
 0x461   :  { %831 = vtanh.f32 %v717_v7  ;;  %v718_v9 = vmul.f32 0.5, %v716_v8 }
 0x463   :  { %833 = vtanh.f32 %v718_v9 }
 0x46b   :  { %v832_v10 = vpop.eup %831 }
 0x46c   :  { %v721_v11 = vmul.f32 0.5, %v832_v10 }
 0x46d   :  { %v834_v12 = vpop.eup %833 }
 0x46e   :  { %v722_v30 = vmul.f32 0.5, %v834_v12  ;;  %v723_v33 = vadd.f32 0.5, %v721_v11 }
 0x470   :  { %v724_v13 = vadd.f32 0.5, %v722_v30  ;;  %725 = vst [vmem:[#allocation16] sm:$0xff] %v723_v33 }
 0x472   :  { %726 = vst [vmem:[#allocation16 + $0x8] sm:$0xff] %v724_v13 }
 0x473   :  { %1022 = shalt.err (!%p1019_p12)
}
 0x474   :  { %s1023_s27 = scalar_lea.hbm %s1345_s13, 256 }
 0x475   :  { %p1024_p13 = scmp.ne.s32.totalorder %s1345_s13, %s1023_s27  ;;  %p1027_p0 = scmp.lt.u32.totalorder %s1023_s27, %s1345_s13 }
 0x477   :  { %p1029_p1 = pnand %p1027_p0, %p1024_p13 }
 0x479   :  { %1032 = shalt.err (!%p1029_p1)
}
 0x47a   :  { %738 = dma.vmem_to_hbm [thread:$0]  %s733_s19, 256, %s1345_s13, [#allocation4], %s1058_s5, %s1058_s5, %s1059_s30  }
 0x47b   :  { %1043 = dma.done.wait [#allocation4], 256  }
 0x47c   :  { %1044 = vsyncadd [#allocation4], 4294967040 }
 0x47d   :  { %742 = vsyncpa [#allocation3], 1 }
 0x47e   :  { %743 = vsyncpa [#allocation6], 1 }
 0x47f   :  { %744 = vsyncpa [#allocation9], 1 }
 0x480   :  { %745 = vsyncpa [#allocation12], 1 }
 0x481   :  { %746 = vsyncpa [#allocation15], 1 }
 0x482   :  { %747 = vsyncpa [#allocation4], 1 }

</bundles_post_ra>
